<compile_context>
chip_gen: v5e
topology: v5e:2x2
jax: 0.10.0
libtpu: 0.0.40
codegen_flags: <defaults>
</compile_context>

<pallas_src>
import math
import functools

import jax
import jax.numpy as jnp
from jax.experimental import pallas as pl
from jax.experimental.pallas import tpu as pltpu

# ---- static model config (consistent with the PyTorch module) ----
HIDDEN = 32          # hidden_size
NB_HEADS = 4         # nb_heads
HEAD_DIM = HIDDEN // NB_HEADS
INNER = 64           # inner_hidden_size
LN_EPS = 1e-5

# Lane-aligned column offsets inside the packed weight slab (each block starts on a
# 128-lane boundary so every kernel slice is tile-aligned).
LANE = 128
Q_OFF = 0                      # Wq * 1/sqrt(D)   in cols [0, 32)
K_OFF = LANE                   # Wk               in cols [128, 160)
VO_OFF = 2 * LANE              # Wvo (H, 4H)      in cols [256, 384)
W1_OFF = 3 * LANE              # W1 (H, INNER)    in cols [384, 448)
W_IN_COLS = 4 * LANE           # total slab width 512


def _layer_norm(x, w, b):
    mu = jnp.mean(x, axis=-1, keepdims=True)
    var = jnp.mean((x - mu) ** 2, axis=-1, keepdims=True)
    return (x - mu) * jax.lax.rsqrt(var + LN_EPS) * w + b


def transformer_layer_kernel(hs_ref, win_ref, w2_ref, vec_ref, out_ref, *, q_len):
    bb, MN, H = hs_ref.shape            # stacked activations: M query rows + N key rows
    M = q_len
    N = MN - M
    D = HEAD_DIM

    hs = hs_ref[...].astype(jnp.float32)                       # (bb, M+N, H)
    hq = hs[:, 0:M, :].reshape(bb * M, H)                      # queries (for residual)

    # ---- fused Q / K / Vo projection: one MXU push over all rows and all three blocks.
    # Query rows use the Wq block, key rows use the Wk / Wvo blocks; the redundant
    # products ride in otherwise-idle MXU lanes.
    proj = jnp.dot(hs.reshape(bb * MN, H), win_ref[:, 0:W1_OFF],
                   preferred_element_type=jnp.float32)         # (bb*(M+N), 384)
    proj = proj.reshape(bb, MN, W1_OFF)
    q = proj[:, 0:M, Q_OFF:Q_OFF + H]                          # (bb, M, H), Wq pre-scaled
    k = proj[:, M:MN, K_OFF:K_OFF + H]                         # (bb, N, H)
    vproj = proj[:, M:MN, VO_OFF:VO_OFF + NB_HEADS * H]        # (bb, N, 4H) = value @ Wvo

    # ---- per-head QK^T scores, stacked on the leading axis (tile-preserving) ----
    scores = []
    for hd in range(NB_HEADS):
        lo = hd * D
        scores.append(jnp.einsum('bmd,bnd->bmn',
                                 q[:, :, lo:lo + D], k[:, :, lo:lo + D],
                                 preferred_element_type=jnp.float32))   # (bb, M, N)
    s = jnp.concatenate(scores, axis=0)                        # (NB_HEADS*bb, M, N)

    # ---- softmax once over all heads: one lane-max, one exp, one lane-sum ----
    s = s - jnp.max(s, axis=-1, keepdims=True)
    e = jnp.exp(s)
    p = e / jnp.sum(e, axis=-1, keepdims=True)                 # exact divide

    # ---- PV with Wo folded in: attn += p_h @ (value @ Wvo_h); 32-lane output per push ----
    attn = None
    for hd in range(NB_HEADS):
        ph = p[hd * bb:(hd + 1) * bb]                          # (bb, M, N)
        vh = vproj[:, :, hd * H:(hd + 1) * H]                  # (bb, N, H)
        c = jnp.einsum('bmn,bnh->bmh', ph, vh,
                       preferred_element_type=jnp.float32)     # (bb, M, H)
        attn = c if attn is None else attn + c
    attn = attn.reshape(bb * M, H)

    # ---- residual + norm1 (LayerNorm) ----
    x = _layer_norm(hq + attn, vec_ref[2:3, 0:H], vec_ref[3:4, 0:H])   # (bb*M, H)

    # ---- feed-forward ----
    b1 = vec_ref[0:1, :]                                       # (1, INNER)
    b2 = vec_ref[1:2, 0:H]                                     # (1, H)
    h1 = jnp.maximum(
        jnp.dot(x, win_ref[:, W1_OFF:W1_OFF + INNER],
                preferred_element_type=jnp.float32) + b1, 0.0)          # (bb*M, INNER)
    h2 = jnp.dot(h1, w2_ref[...], preferred_element_type=jnp.float32) + b2

    # ---- residual + norm2 (LayerNorm) ----
    y = _layer_norm(x + h2, vec_ref[4:5, 0:H], vec_ref[5:6, 0:H])
    out_ref[...] = y.astype(out_ref.dtype)


def _pack_params(params):
    """Pack 12 small tensors into 3 slabs; fold the scale into Wq and Wo into Wv."""
    inv_scale = 1.0 / math.sqrt(HEAD_DIM)
    wq = params["wq"] * inv_scale                              # (H, H)
    wk = params["wk"]                                          # (H, H)

    # Wvo_h = Wv[:, hD:(h+1)D] @ Wo[hD:(h+1)D, :]  ->  (H, NB_HEADS*H) = (32, 128)
    wvo = jnp.concatenate(
        [params["wv"][:, hd * HEAD_DIM:(hd + 1) * HEAD_DIM]
         @ params["wo"][hd * HEAD_DIM:(hd + 1) * HEAD_DIM, :]
         for hd in range(NB_HEADS)], axis=1)

    def pad_cols(w, width):
        return jnp.pad(w, ((0, 0), (0, width - w.shape[1])))

    # Lane-aligned slab: every column block starts on a 128-lane boundary.
    w_in = jnp.concatenate(
        [pad_cols(wq, LANE),              # [  0,128): Wq*inv_scale | zeros
         pad_cols(wk, LANE),              # [128,256): Wk           | zeros
         wvo,                             # [256,384): Wvo
         pad_cols(params["w1"], LANE)],   # [384,512): W1           | zeros
        axis=1).astype(jnp.float32)                                   # (H, 512)

    w2 = params["w2"].astype(jnp.float32)                             # (INNER, H)

    def pad_row(vrow):
        return jnp.pad(vrow, ((0, 0), (0, INNER - vrow.shape[1])))

    vecs = jnp.concatenate(
        [pad_row(params["b1"]), pad_row(params["b2"]),
         pad_row(params["ln1_w"]), pad_row(params["ln1_b"]),
         pad_row(params["ln2_w"]), pad_row(params["ln2_b"]),
         jnp.zeros((2, INNER), jnp.float32)], axis=0)                 # (8, INNER)
    return w_in, w2, vecs


@functools.partial(jax.jit, static_argnames=("num_batch_blocks",))
def transformer_seq_layer(h, h_all, params, num_batch_blocks=1):
    B, M, H = h.shape
    N = h_all.shape[1]
    assert H == HIDDEN
    assert B % num_batch_blocks == 0
    bb = B // num_batch_blocks

    w_in, w2, vecs = _pack_params(params)
    # Stack queries and keys along the sequence axis (wrapper-side layout plumbing) so the
    # kernel can fuse the Q/K/Vo projections into a single MXU push.
    hs = jnp.concatenate([h, h_all], axis=1)                          # (B, M+N, H)

    grid_spec = pltpu.PrefetchScalarGridSpec(
        num_scalar_prefetch=0,
        grid=(num_batch_blocks,),
        in_specs=[
            pl.BlockSpec((bb, M + N, H), lambda i: (i, 0, 0)),        # stacked activations
            pl.BlockSpec((H, W_IN_COLS), lambda i: (0, 0)),           # lane-aligned weights
            pl.BlockSpec((INNER, H), lambda i: (0, 0)),               # W2
            pl.BlockSpec((8, INNER), lambda i: (0, 0)),               # biases + LN params
        ],
        out_specs=pl.BlockSpec((bb * M, H), lambda i: (i, 0)),
    )

    out_flat = pl.pallas_call(
        functools.partial(transformer_layer_kernel, q_len=M),
        out_shape=jax.ShapeDtypeStruct((B * M, H), jnp.float32),
        grid_spec=grid_spec,
        compiler_params=pltpu.CompilerParams(
            # With num_batch_blocks=2 this lets both v7x TensorCores take a block;
            # on single-TC v5e/v6e keep num_batch_blocks=1 (grid is a serial loop).
            dimension_semantics=("parallel",)),
    )(hs, w_in, w2, vecs)

    return out_flat.reshape(B, M, H)


def reference_forward(h, h_all, params):
    """Pure-JAX reference matching the PyTorch forward (eval mode, layer norm)."""
    B, M, H = h.shape
    q = h @ params["wq"]
    k = h_all @ params["wk"]
    v = h_all @ params["wv"]

    def split_heads(x):
        L = x.shape[1]
        return x.reshape(B, L, NB_HEADS, HEAD_DIM).transpose(0, 2, 1, 3)

    qh, kh, vh = split_heads(q), split_heads(k), split_heads(v)
    s = jnp.einsum("bhmd,bhnd->bhmn", qh, kh) / math.sqrt(HEAD_DIM)
    p = jax.nn.softmax(s, axis=-1)
    o = jnp.einsum("bhmn,bhnd->bhmd", p, vh)
    o = o.transpose(0, 2, 1, 3).reshape(B, M, H)
    attn = o @ params["wo"]

    def ln(x, w, b):
        mu = jnp.mean(x, axis=-1, keepdims=True)
        var = jnp.mean((x - mu) ** 2, axis=-1, keepdims=True)
        return (x - mu) * jax.lax.rsqrt(var + LN_EPS) * w + b

    x = ln(h + attn, params["ln1_w"], params["ln1_b"])
    h1 = jnp.maximum(x @ params["w1"] + params["b1"], 0.0)
    h2 = h1 @ params["w2"] + params["b2"]
    return ln(x + h2, params["ln2_w"], params["ln2_b"])


def init_params(key):
    ks = jax.random.split(key, 12)

    def lin(k, fan_in, shape):
        bound = 1.0 / math.sqrt(fan_in)
        return jax.random.uniform(k, shape, jnp.float32, -bound, bound)

    return {
        # Linear weights stored (in, out) == PyTorch weight.T
        "wq": lin(ks[0], HIDDEN, (HIDDEN, HIDDEN)),
        "wk": lin(ks[1], HIDDEN, (HIDDEN, HIDDEN)),
        "wv": lin(ks[2], HIDDEN, (HIDDEN, HIDDEN)),
        "wo": lin(ks[3], HIDDEN, (HIDDEN, HIDDEN)),
        "w1": lin(ks[4], HIDDEN, (HIDDEN, INNER)),
        "b1": lin(ks[5], HIDDEN, (1, INNER)),
        "w2": lin(ks[6], INNER, (INNER, HIDDEN)),
        "b2": lin(ks[7], INNER, (1, HIDDEN)),
        # Normalization.init_parameters: uniform(-1/sqrt(H), 1/sqrt(H)) for weight & bias
        "ln1_w": lin(ks[8], HIDDEN, (1, HIDDEN)),
        "ln1_b": lin(ks[9], HIDDEN, (1, HIDDEN)),
        "ln2_w": lin(ks[10], HIDDEN, (1, HIDDEN)),
        "ln2_b": lin(ks[11], HIDDEN, (1, HIDDEN)),
    }


if __name__ == "__main__":
    key = jax.random.PRNGKey(0)
    k_p, k_h, k_ha = jax.random.split(key, 3)

    B, M, N = 2, 8, 8
    params = init_params(k_p)
    h = jax.random.normal(k_h, (B, M, HIDDEN), jnp.float32)
    h_all = jax.random.normal(k_ha, (B, N, HIDDEN), jnp.float32)

    ref = reference_forward(h, h_all, params)

    # Default: grid=(1,) -- single TensorCore (v5e/v6e) path.
    out = transformer_seq_layer(h, h_all, params)
    out = jax.block_until_ready(out)
    assert out.shape == (B, M, HIDDEN)
    err1 = float(jnp.max(jnp.abs(out - ref)))
    assert jnp.allclose(out, ref, atol=1e-4, rtol=1e-4), f"mismatch vs reference ({err1})"

    # v7x path: two "parallel" batch blocks (one per TensorCore); correctness check only.
    out2 = transformer_seq_layer(h, h_all, params, num_batch_blocks=2)
    out2 = jax.block_until_ready(out2)
    err2 = float(jnp.max(jnp.abs(out2 - ref)))
    assert jnp.allclose(out2, ref, atol=1e-4, rtol=1e-4), f"mismatch vs reference ({err2})"

    print("KERNEL_OK")
</pallas_src>

<mosaic_0001>
module attributes {stable_mosaic.version = 11 : i64} {
  func.func @transformer_layer_kernel(%arg0: i32, %arg1: memref<2x16x32xf32, #tpu.memory_space<vmem>>, %arg2: memref<32x512xf32, #tpu.memory_space<vmem>>, %arg3: memref<64x32xf32, #tpu.memory_space<vmem>>, %arg4: memref<8x64xf32, #tpu.memory_space<vmem>>, %arg5: memref<16x32xf32, #tpu.memory_space<vmem>>) attributes {dimension_semantics = [#tpu.dimension_semantics<parallel>], iteration_bounds = array<i64: 1>, scalar_prefetch = 0 : i64, scratch_operands = 0 : i64, tpu.core_type = #tpu.core_type<tc>, window_params = [{transform_indices = @transform_0, window_bounds = array<i64: 2, 16, 32>}, {pipeline_mode = #tpu.pipeline_mode<synchronous>, transform_indices = @transform_1, window_bounds = array<i64: 32, 512>}, {pipeline_mode = #tpu.pipeline_mode<synchronous>, transform_indices = @transform_2, window_bounds = array<i64: 64, 32>}, {pipeline_mode = #tpu.pipeline_mode<synchronous>, transform_indices = @transform_3, window_bounds = array<i64: 8, 64>}, {transform_indices = @transform_4, window_bounds = array<i64: 16, 32>}]} {
    %c0 = arith.constant 0 : index
    %c0_0 = arith.constant 0 : index
    %c0_1 = arith.constant 0 : index
    %0 = vector.load %arg1[%c0, %c0_0, %c0_1] : memref<2x16x32xf32, #tpu.memory_space<vmem>>, vector<2x16x32xf32>
    %1 = vector.extract_strided_slice %0 {offsets = [0, 0, 0], sizes = [2, 8, 32], strides = [1, 1, 1]} : vector<2x16x32xf32> to vector<2x8x32xf32>
    %2 = vector.shape_cast %1 : vector<2x8x32xf32> to vector<16x32xf32>
    %3 = vector.shape_cast %0 : vector<2x16x32xf32> to vector<32x32xf32>
    %c0_2 = arith.constant 0 : index
    %c0_3 = arith.constant 0 : index
    %4 = vector.load %arg2[%c0_2, %c0_3] : memref<32x512xf32, #tpu.memory_space<vmem>>, vector<32x384xf32>
    %cst = arith.constant dense<0.000000e+00> : vector<32x384xf32>
    %5 = tpu.matmul %3, %4, %cst {dimension_numbers = #tpu.dot_dimension_numbers<[1], [0], [0], [1], [0, 0, 1, 1], [], []>} : vector<32x32xf32>, vector<32x384xf32>, vector<32x384xf32> -> vector<32x384xf32>
    %6 = vector.shape_cast %5 : vector<32x384xf32> to vector<2x16x384xf32>
    %7 = vector.extract_strided_slice %6 {offsets = [0, 0, 0], sizes = [2, 8, 32], strides = [1, 1, 1]} : vector<2x16x384xf32> to vector<2x8x32xf32>
    %8 = vector.extract_strided_slice %6 {offsets = [0, 8, 128], sizes = [2, 8, 32], strides = [1, 1, 1]} : vector<2x16x384xf32> to vector<2x8x32xf32>
    %9 = vector.extract_strided_slice %6 {offsets = [0, 8, 256], sizes = [2, 8, 128], strides = [1, 1, 1]} : vector<2x16x384xf32> to vector<2x8x128xf32>
    %10 = vector.extract_strided_slice %7 {offsets = [0, 0, 0], sizes = [2, 8, 8], strides = [1, 1, 1]} : vector<2x8x32xf32> to vector<2x8x8xf32>
    %11 = vector.extract_strided_slice %8 {offsets = [0, 0, 0], sizes = [2, 8, 8], strides = [1, 1, 1]} : vector<2x8x32xf32> to vector<2x8x8xf32>
    "tpu.trace_start"() <{level = 10 : i32, message = "bmd,bnd->bmn"}> : () -> ()
    %cst_4 = arith.constant dense<0.000000e+00> : vector<2x8x8xf32>
    %12 = tpu.matmul %10, %11, %cst_4 {dimension_numbers = #tpu.dot_dimension_numbers<[2], [2], [1], [1], [0, 0, 0, 1, 1, 1], [0], [0]>} : vector<2x8x8xf32>, vector<2x8x8xf32>, vector<2x8x8xf32> -> vector<2x8x8xf32>
    "tpu.trace_stop"() : () -> ()
    %13 = vector.extract_strided_slice %7 {offsets = [0, 0, 8], sizes = [2, 8, 8], strides = [1, 1, 1]} : vector<2x8x32xf32> to vector<2x8x8xf32>
    %14 = vector.extract_strided_slice %8 {offsets = [0, 0, 8], sizes = [2, 8, 8], strides = [1, 1, 1]} : vector<2x8x32xf32> to vector<2x8x8xf32>
    "tpu.trace_start"() <{level = 10 : i32, message = "bmd,bnd->bmn"}> : () -> ()
    %cst_5 = arith.constant dense<0.000000e+00> : vector<2x8x8xf32>
    %15 = tpu.matmul %13, %14, %cst_5 {dimension_numbers = #tpu.dot_dimension_numbers<[2], [2], [1], [1], [0, 0, 0, 1, 1, 1], [0], [0]>} : vector<2x8x8xf32>, vector<2x8x8xf32>, vector<2x8x8xf32> -> vector<2x8x8xf32>
    "tpu.trace_stop"() : () -> ()
    %16 = vector.extract_strided_slice %7 {offsets = [0, 0, 16], sizes = [2, 8, 8], strides = [1, 1, 1]} : vector<2x8x32xf32> to vector<2x8x8xf32>
    %17 = vector.extract_strided_slice %8 {offsets = [0, 0, 16], sizes = [2, 8, 8], strides = [1, 1, 1]} : vector<2x8x32xf32> to vector<2x8x8xf32>
    "tpu.trace_start"() <{level = 10 : i32, message = "bmd,bnd->bmn"}> : () -> ()
    %cst_6 = arith.constant dense<0.000000e+00> : vector<2x8x8xf32>
    %18 = tpu.matmul %16, %17, %cst_6 {dimension_numbers = #tpu.dot_dimension_numbers<[2], [2], [1], [1], [0, 0, 0, 1, 1, 1], [0], [0]>} : vector<2x8x8xf32>, vector<2x8x8xf32>, vector<2x8x8xf32> -> vector<2x8x8xf32>
    "tpu.trace_stop"() : () -> ()
    %19 = vector.extract_strided_slice %7 {offsets = [0, 0, 24], sizes = [2, 8, 8], strides = [1, 1, 1]} : vector<2x8x32xf32> to vector<2x8x8xf32>
    %20 = vector.extract_strided_slice %8 {offsets = [0, 0, 24], sizes = [2, 8, 8], strides = [1, 1, 1]} : vector<2x8x32xf32> to vector<2x8x8xf32>
    "tpu.trace_start"() <{level = 10 : i32, message = "bmd,bnd->bmn"}> : () -> ()
    %cst_7 = arith.constant dense<0.000000e+00> : vector<2x8x8xf32>
    %21 = tpu.matmul %19, %20, %cst_7 {dimension_numbers = #tpu.dot_dimension_numbers<[2], [2], [1], [1], [0, 0, 0, 1, 1, 1], [0], [0]>} : vector<2x8x8xf32>, vector<2x8x8xf32>, vector<2x8x8xf32> -> vector<2x8x8xf32>
    "tpu.trace_stop"() : () -> ()
    %22 = tpu.concatenate %12, %15, %18, %21 in 0 : vector<2x8x8xf32>, vector<2x8x8xf32>, vector<2x8x8xf32>, vector<2x8x8xf32> -> vector<8x8x8xf32>
    %cst_8 = arith.constant dense<0xFF800000> : vector<8x8xf32>
    %23 = vector.multi_reduction <maximumf>, %22, %cst_8 [2] : vector<8x8x8xf32> to vector<8x8xf32>
    %24 = vector.shape_cast %23 : vector<8x8xf32> to vector<8x8x1xf32>
    %25 = vector.broadcast %24 : vector<8x8x1xf32> to vector<8x8x8xf32>
    %26 = arith.subf %22, %25 : vector<8x8x8xf32>
    %27 = math.exp %26 : vector<8x8x8xf32>
    %cst_9 = arith.constant dense<0.000000e+00> : vector<8x8xf32>
    %28 = vector.multi_reduction <add>, %27, %cst_9 [2] : vector<8x8x8xf32> to vector<8x8xf32>
    %29 = vector.shape_cast %28 : vector<8x8xf32> to vector<8x8x1xf32>
    %30 = vector.broadcast %29 : vector<8x8x1xf32> to vector<8x8x8xf32>
    %31 = arith.divf %27, %30 : vector<8x8x8xf32>
    %32 = vector.extract_strided_slice %31 {offsets = [0, 0, 0], sizes = [2, 8, 8], strides = [1, 1, 1]} : vector<8x8x8xf32> to vector<2x8x8xf32>
    %33 = vector.extract_strided_slice %9 {offsets = [0, 0, 0], sizes = [2, 8, 32], strides = [1, 1, 1]} : vector<2x8x128xf32> to vector<2x8x32xf32>
    "tpu.trace_start"() <{level = 10 : i32, message = "bmn,bnh->bmh"}> : () -> ()
    %cst_10 = arith.constant dense<0.000000e+00> : vector<2x8x32xf32>
    %34 = tpu.matmul %32, %33, %cst_10 {dimension_numbers = #tpu.dot_dimension_numbers<[2], [1], [1], [2], [0, 0, 0, 1, 1, 2], [0], [0]>} : vector<2x8x8xf32>, vector<2x8x32xf32>, vector<2x8x32xf32> -> vector<2x8x32xf32>
    "tpu.trace_stop"() : () -> ()
    %35 = vector.extract_strided_slice %31 {offsets = [2, 0, 0], sizes = [2, 8, 8], strides = [1, 1, 1]} : vector<8x8x8xf32> to vector<2x8x8xf32>
    %36 = vector.extract_strided_slice %9 {offsets = [0, 0, 32], sizes = [2, 8, 32], strides = [1, 1, 1]} : vector<2x8x128xf32> to vector<2x8x32xf32>
    "tpu.trace_start"() <{level = 10 : i32, message = "bmn,bnh->bmh"}> : () -> ()
    %cst_11 = arith.constant dense<0.000000e+00> : vector<2x8x32xf32>
    %37 = tpu.matmul %35, %36, %cst_11 {dimension_numbers = #tpu.dot_dimension_numbers<[2], [1], [1], [2], [0, 0, 0, 1, 1, 2], [0], [0]>} : vector<2x8x8xf32>, vector<2x8x32xf32>, vector<2x8x32xf32> -> vector<2x8x32xf32>
    "tpu.trace_stop"() : () -> ()
    %38 = arith.addf %34, %37 : vector<2x8x32xf32>
    %39 = vector.extract_strided_slice %31 {offsets = [4, 0, 0], sizes = [2, 8, 8], strides = [1, 1, 1]} : vector<8x8x8xf32> to vector<2x8x8xf32>
    %40 = vector.extract_strided_slice %9 {offsets = [0, 0, 64], sizes = [2, 8, 32], strides = [1, 1, 1]} : vector<2x8x128xf32> to vector<2x8x32xf32>
    "tpu.trace_start"() <{level = 10 : i32, message = "bmn,bnh->bmh"}> : () -> ()
    %cst_12 = arith.constant dense<0.000000e+00> : vector<2x8x32xf32>
    %41 = tpu.matmul %39, %40, %cst_12 {dimension_numbers = #tpu.dot_dimension_numbers<[2], [1], [1], [2], [0, 0, 0, 1, 1, 2], [0], [0]>} : vector<2x8x8xf32>, vector<2x8x32xf32>, vector<2x8x32xf32> -> vector<2x8x32xf32>
    "tpu.trace_stop"() : () -> ()
    %42 = arith.addf %38, %41 : vector<2x8x32xf32>
    %43 = vector.extract_strided_slice %31 {offsets = [6, 0, 0], sizes = [2, 8, 8], strides = [1, 1, 1]} : vector<8x8x8xf32> to vector<2x8x8xf32>
    %44 = vector.extract_strided_slice %9 {offsets = [0, 0, 96], sizes = [2, 8, 32], strides = [1, 1, 1]} : vector<2x8x128xf32> to vector<2x8x32xf32>
    "tpu.trace_start"() <{level = 10 : i32, message = "bmn,bnh->bmh"}> : () -> ()
    %cst_13 = arith.constant dense<0.000000e+00> : vector<2x8x32xf32>
    %45 = tpu.matmul %43, %44, %cst_13 {dimension_numbers = #tpu.dot_dimension_numbers<[2], [1], [1], [2], [0, 0, 0, 1, 1, 2], [0], [0]>} : vector<2x8x8xf32>, vector<2x8x32xf32>, vector<2x8x32xf32> -> vector<2x8x32xf32>
    "tpu.trace_stop"() : () -> ()
    %46 = arith.addf %42, %45 : vector<2x8x32xf32>
    %47 = vector.shape_cast %46 : vector<2x8x32xf32> to vector<16x32xf32>
    %48 = arith.addf %2, %47 : vector<16x32xf32>
    %c2 = arith.constant 2 : index
    %c0_14 = arith.constant 0 : index
    %49 = vector.load %arg4[%c2, %c0_14] : memref<8x64xf32, #tpu.memory_space<vmem>>, vector<1x32xf32>
    %c3 = arith.constant 3 : index
    %c0_15 = arith.constant 0 : index
    %50 = vector.load %arg4[%c3, %c0_15] : memref<8x64xf32, #tpu.memory_space<vmem>>, vector<1x32xf32>
    %cst_16 = arith.constant dense<0.000000e+00> : vector<16xf32>
    %51 = vector.multi_reduction <add>, %48, %cst_16 [1] : vector<16x32xf32> to vector<16xf32>
    %52 = vector.shape_cast %51 : vector<16xf32> to vector<16x1xf32>
    %cst_17 = arith.constant 3.200000e+01 : f32
    %53 = vector.broadcast %cst_17 : f32 to vector<16x1xf32>
    %54 = arith.divf %52, %53 : vector<16x1xf32>
    %55 = vector.broadcast %54 : vector<16x1xf32> to vector<16x32xf32>
    %56 = arith.subf %48, %55 : vector<16x32xf32>
    %57 = arith.mulf %56, %56 : vector<16x32xf32>
    %cst_18 = arith.constant dense<0.000000e+00> : vector<16xf32>
    %58 = vector.multi_reduction <add>, %57, %cst_18 [1] : vector<16x32xf32> to vector<16xf32>
    %59 = vector.shape_cast %58 : vector<16xf32> to vector<16x1xf32>
    %cst_19 = arith.constant 3.200000e+01 : f32
    %60 = vector.broadcast %cst_19 : f32 to vector<16x1xf32>
    %61 = arith.divf %59, %60 : vector<16x1xf32>
    %62 = vector.broadcast %54 : vector<16x1xf32> to vector<16x32xf32>
    %63 = arith.subf %48, %62 : vector<16x32xf32>
    %cst_20 = arith.constant 9.99999974E-6 : f32
    %64 = vector.broadcast %cst_20 : f32 to vector<16x1xf32>
    %65 = arith.addf %61, %64 : vector<16x1xf32>
    %66 = math.rsqrt %65 : vector<16x1xf32>
    %67 = vector.broadcast %66 : vector<16x1xf32> to vector<16x32xf32>
    %68 = arith.mulf %63, %67 : vector<16x32xf32>
    %69 = vector.broadcast %49 : vector<1x32xf32> to vector<16x32xf32>
    %70 = arith.mulf %68, %69 : vector<16x32xf32>
    %71 = vector.broadcast %50 : vector<1x32xf32> to vector<16x32xf32>
    %72 = arith.addf %70, %71 : vector<16x32xf32>
    %c0_21 = arith.constant 0 : index
    %c0_22 = arith.constant 0 : index
    %73 = vector.load %arg4[%c0_21, %c0_22] : memref<8x64xf32, #tpu.memory_space<vmem>>, vector<1x64xf32>
    %c1 = arith.constant 1 : index
    %c0_23 = arith.constant 0 : index
    %74 = vector.load %arg4[%c1, %c0_23] : memref<8x64xf32, #tpu.memory_space<vmem>>, vector<1x32xf32>
    %c0_24 = arith.constant 0 : index
    %c384 = arith.constant 384 : index
    %75 = vector.load %arg2[%c0_24, %c384] : memref<32x512xf32, #tpu.memory_space<vmem>>, vector<32x64xf32>
    %cst_25 = arith.constant dense<0.000000e+00> : vector<16x64xf32>
    %76 = tpu.matmul %72, %75, %cst_25 {dimension_numbers = #tpu.dot_dimension_numbers<[1], [0], [0], [1], [0, 0, 1, 1], [], []>} : vector<16x32xf32>, vector<32x64xf32>, vector<16x64xf32> -> vector<16x64xf32>
    %77 = vector.broadcast %73 : vector<1x64xf32> to vector<16x64xf32>
    %78 = arith.addf %76, %77 : vector<16x64xf32>
    %cst_26 = arith.constant 0.000000e+00 : f32
    %79 = vector.broadcast %cst_26 : f32 to vector<16x64xf32>
    %80 = arith.maximumf %78, %79 : vector<16x64xf32>
    %c0_27 = arith.constant 0 : index
    %c0_28 = arith.constant 0 : index
    %81 = vector.load %arg3[%c0_27, %c0_28] : memref<64x32xf32, #tpu.memory_space<vmem>>, vector<64x32xf32>
    %cst_29 = arith.constant dense<0.000000e+00> : vector<16x32xf32>
    %82 = tpu.matmul %80, %81, %cst_29 {dimension_numbers = #tpu.dot_dimension_numbers<[1], [0], [0], [1], [0, 0, 1, 1], [], []>} : vector<16x64xf32>, vector<64x32xf32>, vector<16x32xf32> -> vector<16x32xf32>
    %83 = vector.broadcast %74 : vector<1x32xf32> to vector<16x32xf32>
    %84 = arith.addf %82, %83 : vector<16x32xf32>
    %85 = arith.addf %72, %84 : vector<16x32xf32>
    %c4 = arith.constant 4 : index
    %c0_30 = arith.constant 0 : index
    %86 = vector.load %arg4[%c4, %c0_30] : memref<8x64xf32, #tpu.memory_space<vmem>>, vector<1x32xf32>
    %c5 = arith.constant 5 : index
    %c0_31 = arith.constant 0 : index
    %87 = vector.load %arg4[%c5, %c0_31] : memref<8x64xf32, #tpu.memory_space<vmem>>, vector<1x32xf32>
    %cst_32 = arith.constant dense<0.000000e+00> : vector<16xf32>
    %88 = vector.multi_reduction <add>, %85, %cst_32 [1] : vector<16x32xf32> to vector<16xf32>
    %89 = vector.shape_cast %88 : vector<16xf32> to vector<16x1xf32>
    %cst_33 = arith.constant 3.200000e+01 : f32
    %90 = vector.broadcast %cst_33 : f32 to vector<16x1xf32>
    %91 = arith.divf %89, %90 : vector<16x1xf32>
    %92 = vector.broadcast %91 : vector<16x1xf32> to vector<16x32xf32>
    %93 = arith.subf %85, %92 : vector<16x32xf32>
    %94 = arith.mulf %93, %93 : vector<16x32xf32>
    %cst_34 = arith.constant dense<0.000000e+00> : vector<16xf32>
    %95 = vector.multi_reduction <add>, %94, %cst_34 [1] : vector<16x32xf32> to vector<16xf32>
    %96 = vector.shape_cast %95 : vector<16xf32> to vector<16x1xf32>
    %cst_35 = arith.constant 3.200000e+01 : f32
    %97 = vector.broadcast %cst_35 : f32 to vector<16x1xf32>
    %98 = arith.divf %96, %97 : vector<16x1xf32>
    %99 = vector.broadcast %91 : vector<16x1xf32> to vector<16x32xf32>
    %100 = arith.subf %85, %99 : vector<16x32xf32>
    %cst_36 = arith.constant 9.99999974E-6 : f32
    %101 = vector.broadcast %cst_36 : f32 to vector<16x1xf32>
    %102 = arith.addf %98, %101 : vector<16x1xf32>
    %103 = math.rsqrt %102 : vector<16x1xf32>
    %104 = vector.broadcast %103 : vector<16x1xf32> to vector<16x32xf32>
    %105 = arith.mulf %100, %104 : vector<16x32xf32>
    %106 = vector.broadcast %86 : vector<1x32xf32> to vector<16x32xf32>
    %107 = arith.mulf %105, %106 : vector<16x32xf32>
    %108 = vector.broadcast %87 : vector<1x32xf32> to vector<16x32xf32>
    %109 = arith.addf %107, %108 : vector<16x32xf32>
    %c0_37 = arith.constant 0 : index
    %c0_38 = arith.constant 0 : index
    %110 = vector.load %arg5[%c0_37, %c0_38] : memref<16x32xf32, #tpu.memory_space<vmem>>, vector<16x32xf32>
    tpu.vector_store %arg5[%c0_37, %c0_38], %109 {strides = array<i32>} : memref<16x32xf32, #tpu.memory_space<vmem>>, vector<16x32xf32>,
    return
  }
  func.func @transform_0(%arg0: i32) -> (i32, i32, i32) {
    %c0_i32 = arith.constant 0 : i32
    %c0_i32_0 = arith.constant 0 : i32
    %c0_i32_1 = arith.constant 0 : i32
    return %arg0, %c0_i32, %c0_i32_0 : i32, i32, i32
  }
  func.func @transform_1(%arg0: i32) -> (i32, i32) {
    %c0_i32 = arith.constant 0 : i32
    %c0_i32_0 = arith.constant 0 : i32
    %c0_i32_1 = arith.constant 0 : i32
    return %c0_i32, %c0_i32_0 : i32, i32
  }
  func.func @transform_2(%arg0: i32) -> (i32, i32) {
    %c0_i32 = arith.constant 0 : i32
    %c0_i32_0 = arith.constant 0 : i32
    %c0_i32_1 = arith.constant 0 : i32
    return %c0_i32, %c0_i32_0 : i32, i32
  }
  func.func @transform_3(%arg0: i32) -> (i32, i32) {
    %c0_i32 = arith.constant 0 : i32
    %c0_i32_0 = arith.constant 0 : i32
    %c0_i32_1 = arith.constant 0 : i32
    return %c0_i32, %c0_i32_0 : i32, i32
  }
  func.func @transform_4(%arg0: i32) -> (i32, i32) {
    %c0_i32 = arith.constant 0 : i32
    %c0_i32_0 = arith.constant 0 : i32
    return %arg0, %c0_i32 : i32, i32
  }
}

</mosaic_0001>

<bundles_post_ra>
// kernel: transformer_seq_layer.1
= control target key start
LH: loop header
LB: loop body
LE: loop exit
PB: predicated region body
PF: predicated region fallthrough
CT: control target
= control target key end

     0   :  { %vm34_vm0 = vcmask 261120   ;;  %s1398_s0 = inlined_call_operand.vmem [shape: f32[2,16,32], index: 0, kind: input, shape index: {}]   ;;  %s1399_s1 = inlined_call_operand.vmem [shape: f32[32,512], index: 1, kind: input, shape index: {}]   ;;  %s1400_s2 = inlined_call_operand.vmem [shape: f32[64,32], index: 2, kind: input, shape index: {}]   ;;  %s1401_s3 = inlined_call_operand.vmem [shape: f32[8,64], index: 3, kind: input, shape index: {}]   ;;  %s1402_s4 = inlined_call_operand.hbm [shape: f32[16,32], index: 4, kind: output, shape index: {}]  }
   0x1   :  { %v31_v0 = vld [vmem:[%s1399_s1 + $0x60] sm:$0xff]  ;;  %v1144_v4 = vld [vmem:[%s1398_s0 + $0x18] sm:$0xff] }
   0x2   :  { %v28_v1 = vld [vmem:[%s1399_s1 + $0x40] sm:$0xff]  ;;  %1001 = vmatpush.msra.mxu1 %v31_v0  ;;  %59 = vmatpush.msra.mxu0 %v31_v0 }
   0x3   :  { %v25_v2 = vld [vmem:[%s1399_s1 + $0x20] sm:$0xff] }
   0x4   :  { %1002 = vmatpush.msra.mxu1 %v28_v1  ;;  %v22_v3 = vld [vmem:[%s1399_s1] sm:$0xff]  ;;  %60 = vmatpush.msra.mxu0 %v28_v1 }
   0x6   :  { %1003 = vmatpush.msra.mxu1 %v25_v2  ;;  %61 = vmatpush.msra.mxu0 %v25_v2 }
   0x7   :  { %9 = vsyncpa [#allocation3], 0  ;;  %v32_v5 = vld [vmem:[%s1399_s1 + $0x68] sm:$0xff]  ;;  %v1152_v6 = vld [vmem:[%s1398_s0] sm:$0xff]  ;;  %vm128_vm1 = vcmask 64512   ;;  %s1094_s13 = smov 112  }
   0x8   :  { %1004 = vmatpush.msra.mxu1 %v22_v3  ;;  %62 = vmatpush.msra.mxu0 %v22_v3  ;;  %v29_v7 = vld [vmem:[%s1399_s1 + $0x48] sm:$0xff]  ;;  %v1176_v11 = vld [vmem:[%s1398_s0 + $0x10] sm:$0xff]  ;;  %s1096_s14 = smov 104   ;;  %s1097_s23 = smov 64  }
   0x9   :  { %964 = vmatmul.msk.f32.vlgmr.msra.gmra.mxu1 %vm34_vm0, %v1144_v4  ;;  %961 = vmatmul.msk.f32.vlgmr.msra.gmra.mxu0 %vm34_vm0, %v1152_v6  ;;  %v26_v8 = vld [vmem:[%s1399_s1 + $0x28] sm:$0xff]  ;;  %v33_v20 = vld [vmem:[%s1399_s1 + $0x70] sm:$0xff]  ;;  %s1098_s24 = smov 96   ;;  %s1099_s25 = smov 32  }
   0xa   :  { %86 = vmatpush.msrb.mxu1 %v32_v5  ;;  %v23_v9 = vld [vmem:[%s1399_s1 + $0x8] sm:$0xff]  ;;  %v30_v21 = vld [vmem:[%s1399_s1 + $0x50] sm:$0xff]  ;;  %113 = vmatpush.msra.mxu2 %v33_v20  ;;  %s1101_s7 = smov [#allocation2]   ;;  %s949_s11 = sshll.u32 %s1402_s4, 4  ;;  %s950_s11 = int_to_ptr.hbm [resolvable:$true] %s949_s11 }
   0xb   :  { %v19_v10 = vld [vmem:[%s1398_s0 + $0x8] sm:$0xff]  ;;  %s1095_s0 = smov 120   ;;  %v27_v22 = vld [vmem:[%s1399_s1 + $0x30] sm:$0xff]  ;;  %s947_s8 = sshll.u32 %s1101_s7, 4  ;;  %s948_s8 = int_to_ptr.vmem [resolvable:$true] %s947_s8 }
   0xc   :  { %87 = vmatpush.msrb.mxu1 %v29_v7  ;;  %114 = vmatpush.msra.mxu2 %v30_v21  ;;  %v24_v23 = vld [vmem:[%s1399_s1 + $0x10] sm:$0xff] }
   0xe   :  { %88 = vmatpush.msrb.mxu1 %v26_v8  ;;  %115 = vmatpush.msra.mxu2 %v27_v22 }
  0x10   :  { %89 = vmatpush.msrb.mxu1 %v23_v9  ;;  %116 = vmatpush.msra.mxu2 %v24_v23 }
  0x11   :  { %965 = vmatmul.msk.f32.vlgmr.msrb.gmra.mxu1 %vm34_vm0, %v1152_v6  ;;  %962 = vmatmul.msk.f32.gmra.mxu0 %vm34_vm0, %v19_v10 }
  0x12   :  { %969 = vmatmul.msk.f32.vlgmr.msra.gmra.mxu2 %vm34_vm0, %v1152_v6 }
  0x19   :  { %966 = vmatmul.msk.f32.gmra.mxu1 %vm34_vm0, %v19_v10  ;;  %963 = vmatmul.msk.f32.gmra.mxu0 %vm34_vm0, %v1176_v11 }
  0x1a   :  { %970 = vmatmul.msk.f32.gmra.mxu2 %vm34_vm0, %v19_v10 }
  0x21   :  { %967 = vmatmul.msk.f32.gmra.mxu1 %vm34_vm0, %v1176_v11 }
  0x22   :  { %971 = vmatmul.msk.f32.gmra.mxu2 %vm34_vm0, %v1176_v11 }
  0x29   :  { %968 = vmatmul.msk.f32.gmra.mxu1 %vm34_vm0, %v1144_v4 }
  0x2a   :  { %972 = vmatmul.msk.f32.gmra.mxu2 %vm34_vm0, %v1144_v4 }
  0x86   :  { %v72_v12 = vpop.f32.mrf.mxu1  ;;  %v64_v13 = vpop.f32.mrf.mxu0 }
  0x8e   :  { %v91_v14 = vpop.f32.mrf.mxu1  ;;  %v67_v15 = vpop.f32.mrf.mxu0 }
  0x95   :  { %v118_v40 = vpop.f32.mrf.mxu2 }
  0x96   :  { %v93_v16 = vpop.f32.mrf.mxu1  ;;  %v69_v19 = vpop.f32.mrf.mxu0 }
  0x97   :  { %239 = vrot.lane.b32.xlu2 %v93_v16, %s1094_s13  ;;  %183 = vrot.lane.b32.xlu0 %v93_v16, %s1095_s0 }
  0x98   :  { %973 = vmatpush.xpose.msk.msra.mxu3 %vm128_vm1, %v93_v16 }
  0x9b   :  { %974 = vmatmul.msk.f32.vlgmr.msra.gmra.mxu3 %vm128_vm1, %v64_v13 }
  0x9d   :  { %v1222_v41 = vpop.f32.mrf.mxu2 }
  0x9e   :  { %v96_v17 = vpop.f32.mrf.mxu1 }
  0x9f   :  { %181 = vrot.lane.b32.xlu0 %v64_v13, %s1095_s0 }
  0xa5   :  { %v123_v42 = vpop.f32.mrf.mxu2 }
  0xa6   :  { %v98_v18 = vpop.f32.mrf.mxu1 }
  0xa7   :  { %267 = vrot.lane.b32.xlu2 %v98_v18, %s1094_s13  ;;  %211 = vrot.lane.b32.xlu1 %v98_v18, %s1095_s0 }
  0xa8   :  { %975 = vmatpush.xpose.msk.msrb.mxu3 %vm128_vm1, %v98_v18  ;;  %237 = vrot.lane.b32.xlu0 %v64_v13, %s1094_s13 }
  0xab   :  { %976 = vmatmul.msk.f32.vlgmr.msrb.gmra.mxu3 %vm128_vm1, %v69_v19 }
  0xad   :  { %v1225_v43 = vpop.f32.mrf.mxu2 }
  0xaf   :  { %323 = vrot.lane.b32.xlu2 %v98_v18, %s1096_s14  ;;  %209 = vrot.lane.b32.xlu1 %v69_v19, %s1095_s0 }
  0xb0   :  { %321 = vrot.lane.b32.xlu0 %v69_v19, %s1096_s14 }
  0xb7   :  { %293 = vrot.lane.b32.xlu2 %v64_v13, %s1096_s14  ;;  %265 = vrot.lane.b32.xlu1 %v69_v19, %s1094_s13 }
  0xbf   :  { %295 = vrot.lane.b32.xlu1 %v93_v16, %s1096_s14 }
  0xf1   :  { %v240_v24 = vpop.permute.xlu2 %239 }
 0x101   :  { %v268_v25 = vpop.permute.xlu2 %267 }
 0x102   :  { %983 = vmatpush.xpose.msk.msrb.mxu2 %vm128_vm1, %v268_v25 }
 0x109   :  { %v184_v26 = vpop.permute.xlu0 %183  ;;  %v324_v27 = vpop.permute.xlu2 %323 }
 0x10a   :  { %977 = vmatpush.xpose.msk.msra.mxu3 %vm128_vm1, %v184_v26  ;;  %987 = vmatpush.xpose.msk.msra.mxu2 %vm128_vm1, %v324_v27 }
 0x111   :  { %v182_v28 = vpop.permute.xlu0 %181  ;;  %v294_v39 = vpop.permute.xlu2 %293 }
 0x112   :  { %978 = vmatmul.msk.f32.vlgmr.msra.gmra.mxu3 %vm128_vm1, %v182_v28 }
 0x119   :  { %v212_v29 = vpop.permute.xlu1 %211 }
 0x11a   :  { %979 = vmatpush.xpose.msk.msrb.mxu3 %vm128_vm1, %v212_v29  ;;  %v238_v33 = vpop.permute.xlu0 %237 }
 0x11e   :  { %981 = vmatpush.xpose.msk.msra.mxu3 %vm128_vm1, %v240_v24  ;;  %v152_v30 = vpop.f32.mrf.mxu3 }
 0x11f   :  { %v349_v31 = vsel %vm128_vm1, %v152_v30, -inf }
 0x120   :  { %350 = vmax.xlane.f32.xlu1 %v349_v31 }
 0x121   :  { %v210_v32 = vpop.permute.xlu1 %209 }
 0x122   :  { %980 = vmatmul.msk.f32.vlgmr.msrb.gmra.mxu3 %vm128_vm1, %v210_v32  ;;  %v322_v37 = vpop.permute.xlu0 %321 }
 0x129   :  { %v266_v34 = vpop.permute.xlu1 %265 }
 0x12a   :  { %982 = vmatmul.msk.f32.vlgmr.msra.gmra.mxu3 %vm128_vm1, %v238_v33  ;;  %984 = vmatmul.msk.f32.vlgmr.msrb.gmra.mxu2 %vm128_vm1, %v266_v34 }
 0x12b   :  { %636 = vmatpush.msrb.mxu2 %v1225_v43 }
 0x12e   :  { %v178_v35 = vpop.f32.mrf.mxu3 }
 0x12f   :  { %v352_v36 = vsel %vm128_vm1, %v178_v35, -inf }
 0x130   :  { %353 = vmax.xlane.f32.xlu2 %v352_v36 }
 0x131   :  { %v296_v38 = vpop.permute.xlu1 %295 }
 0x132   :  { %985 = vmatpush.xpose.msk.msra.mxu1 %vm128_vm1, %v296_v38  ;;  %988 = vmatmul.msk.f32.vlgmr.msra.gmra.mxu2 %vm128_vm1, %v322_v37 }
 0x135   :  { %986 = vmatmul.msk.f32.vlgmr.msra.gmra.mxu1 %vm128_vm1, %v294_v39 }
 0x136   :  { %613 = vmatpush.msrb.mxu1 %v1222_v41 }
 0x193   :  { %v351_v44 = vpop.xlane.xlu1 %350 }
 0x194   :  { %v373_v45 = vsub.f32 %v152_v30, %v351_v44 }
 0x195   :  { %v206_v46 = vpop.f32.mrf.mxu3 }
 0x196   :  { %v381_v47 = vmul.f32 1.442695, %v373_v45  ;;  %v355_v48 = vsel %vm128_vm1, %v206_v46, -inf }
 0x197   :  { %356 = vmax.xlane.f32.xlu0 %v355_v48 }
 0x198   :  { %1026 = vpow2.f32 %v381_v47  ;;  %v1015_v47 = vpack.i.bf16 %v1225_v43, %v1222_v41 }
 0x19e   :  { %v1027_v49 = vpop.eup %1026 }
 0x19f   :  { %v397_v50 = vsel %vm128_vm1, %v1027_v49, 0.0 }
 0x1a0   :  { %398 = vadd.xlane.f32.xlu2 %v397_v50 }
 0x1a3   :  { %v354_v61 = vpop.xlane.xlu2 %353 }
 0x1a4   :  { %v374_v62 = vsub.f32 %v178_v35, %v354_v61 }
 0x1a5   :  { %v234_v51 = vpop.f32.mrf.mxu3 }
 0x1a6   :  { %v358_v52 = vsel %vm128_vm1, %v234_v51, -inf  ;;  %v383_v63 = vmul.f32 1.442695, %v374_v62 }
 0x1a7   :  { %359 = vmax.xlane.f32.xlu0 %v358_v52 }
 0x1a8   :  { %1028 = vpow2.f32 %v383_v63 }
 0x1ad   :  { %v1231_v53 = vpop.f32.mrf.mxu3  ;;  %v1233_v54 = vpop.f32.mrf.mxu2 }
 0x1ae   :  { %v364_v55 = vsel %vm128_vm1, %v1233_v54, -inf  ;;  %v361_v56 = vsel %vm128_vm1, %v1231_v53, -inf  ;;  %v1245_v0 = vpop.eup %1028 }
 0x1af   :  { %365 = vmax.xlane.f32.xlu0 %v364_v55  ;;  %362 = vmax.xlane.f32.xlu2 %v361_v56  ;;  %v400_v1 = vsel %vm128_vm1, %v1245_v0, 0.0 }
 0x1b2   :  { %v318_v57 = vpop.f32.mrf.mxu1 }
 0x1b3   :  { %v367_v58 = vsel %vm128_vm1, %v318_v57, -inf }
 0x1b4   :  { %368 = vmax.xlane.f32.xlu1 %v367_v58 }
 0x1b5   :  { %v346_v59 = vpop.f32.mrf.mxu2 }
 0x1b6   :  { %v370_v60 = vsel %vm128_vm1, %v346_v59, -inf }
 0x1b7   :  { %371 = vmax.xlane.f32.xlu2 %v370_v60 }
 0x1cd   :  { %641 = vrot.lane.b32.xlu1 %v1222_v41, %s1097_s23 }
 0x1cf   :  { %542 = vrot.lane.b32.xlu2 %v1222_v41, %s1098_s24 }
 0x1f7   :  { %401 = vadd.xlane.f32.xlu1 %v400_v1 }
 0x20a   :  { %v357_v2 = vpop.xlane.xlu0 %356 }
 0x20b   :  { %v375_v3 = vsub.f32 %v206_v46, %v357_v2 }
 0x20d   :  { %v385_v4 = vmul.f32 1.442695, %v375_v3 }
 0x20f   :  { %1030 = vpow2.f32 %v385_v4 }
 0x213   :  { %v399_v5 = vpop.xlane.xlu2 %398 }
 0x214   :  { %1032 = vrcp.f32 %v399_v5  ;;  %v432_v16 = vand.u32 2147483648, %v399_v5  ;;  %v430_v18 = vand.u32 2147483647, %v399_v5  ;;  %vm426_vm3 = vweird.f32 %v399_v5 }
 0x215   :  { %v1249_v7 = vpop.eup %1030 }
 0x216   :  { %v403_v8 = vsel %vm128_vm1, %v1249_v7, 0.0  ;;  %v433_v20 = vor.u32 1.1754944e-38, %v432_v16  ;;  %vm431_vm5 = vcmp.eq.f32.partialorder %v430_v18, 8.507059e+37 }
 0x217   :  { %404 = vadd.xlane.f32.xlu1 %v403_v8 }
 0x21a   :  { %v1033_v9 = vpop.eup %1032  ;;  %v360_v10 = vpop.xlane.xlu0 %359 }
 0x21b   :  { %v422_v12 = vmul.f32 %v1033_v9, %v399_v5  ;;  %v376_v13 = vsub.f32 %v234_v51, %v360_v10  ;;  %vm427_vm2 = vweird.f32 %v1033_v9 }
 0x21c   :  { %vm428_vm4 = vmor %vm426_vm3, %vm427_vm2 }
 0x21d   :  { %v423_v14 = vsub.f32 1.0, %v422_v12  ;;  %v387_v15 = vmul.f32 1.442695, %v376_v13 }
 0x21f   :  { %v424_v17 = vmul.f32 %v1033_v9, %v423_v14  ;;  %1034 = vpow2.f32 %v387_v15 }
 0x221   :  { %v425_v19 = vadd.f32 %v1033_v9, %v424_v17 }
 0x222   :  { %v363_v21 = vpop.xlane.xlu2 %362  ;;  %v366_v27 = vpop.xlane.xlu0 %365 }
 0x223   :  { %v429_v22 = vsel %vm428_vm4, %v1033_v9, %v425_v19  ;;  %v378_v30 = vsub.f32 %v1233_v54, %v366_v27  ;;  %v377_v37 = vsub.f32 %v1231_v53, %v363_v21 }
 0x224   :  { %v434_v23 = vsel %vm431_vm5, %v433_v20, %v429_v22 }
 0x225   :  { %v1253_v24 = vpop.eup %1034  ;;  %v435_v25 = vmul.f32 %v1027_v49, %v434_v23  ;;  %v391_v35 = vmul.f32 1.442695, %v378_v30  ;;  %v389_v42 = vmul.f32 1.442695, %v377_v37 }
 0x226   :  { %v406_v26 = vsel %vm128_vm1, %v1253_v24, 0.0 }
 0x227   :  { %991 = vmatmul.msk.f32.vlgmr.msrb.gmra.mxu1 %vm128_vm1, %v435_v25  ;;  %v369_v28 = vpop.xlane.xlu1 %368  ;;  %407 = vadd.xlane.f32.xlu2 %v406_v26 }
 0x228   :  { %v379_v29 = vsub.f32 %v318_v57, %v369_v28 }
 0x22a   :  { %v393_v31 = vmul.f32 1.442695, %v379_v29  ;;  %v372_v32 = vpop.xlane.xlu2 %371 }
 0x22b   :  { %v380_v33 = vsub.f32 %v346_v59, %v372_v32 }
 0x22c   :  { %1036 = vpow2.f32 %v393_v31 }
 0x22d   :  { %v395_v34 = vmul.f32 1.442695, %v380_v33 }
 0x22f   :  { %1038 = vpow2.f32 %v395_v34 }
 0x230   :  { %1040 = vpow2.f32 %v391_v35 }
 0x231   :  { %1042 = vpow2.f32 %v389_v42 }
 0x232   :  { %v1259_v36 = vpop.eup %1036  ;;  %v543_v38 = vpop.permute.xlu2 %542 }
 0x233   :  { %563 = vmatpush.msrb.mxu3 %v543_v38  ;;  %v415_v39 = vsel %vm128_vm1, %v1259_v36, 0.0 }
 0x234   :  { %416 = vadd.xlane.f32.xlu0 %v415_v39 }
 0x235   :  { %v1264_v40 = vpop.eup %1038 }
 0x236   :  { %v418_v44 = vsel %vm128_vm1, %v1264_v40, 0.0  ;;  %v1268_v45 = vpop.eup %1040 }
 0x237   :  { %419 = vadd.xlane.f32.xlu1 %v418_v44  ;;  %v412_v46 = vsel %vm128_vm1, %v1268_v45, 0.0  ;;  %v1274_v49 = vpop.eup %1042 }
 0x238   :  { %v409_v50 = vsel %vm128_vm1, %v1274_v49, 0.0 }
 0x23c   :  { %413 = vadd.xlane.f32.xlu0 %v412_v46 }
 0x23f   :  { %v642_v48 = vpop.permute.xlu1 %641  ;;  %1016 = vrot.lane.b32.xlu2 %v1015_v47, %s1099_s25 }
 0x240   :  { %662 = vmatpush.msra.mxu3 %v642_v48 }
 0x244   :  { %410 = vadd.xlane.f32.xlu0 %v409_v50 }
 0x250   :  { %667 = vrot.lane.b32.xlu1 %v1225_v43, %s1097_s23 }
 0x258   :  { %569 = vrot.lane.b32.xlu0 %v1225_v43, %s1098_s24 }
 0x26a   :  { %v402_v51 = vpop.xlane.xlu1 %401 }
 0x26b   :  { %1044 = vrcp.f32 %v402_v51  ;;  %v447_v54 = vand.u32 2147483648, %v402_v51  ;;  %v445_v56 = vand.u32 2147483647, %v402_v51  ;;  %vm441_vm7 = vweird.f32 %v402_v51 }
 0x26d   :  { %v448_v58 = vor.u32 1.1754944e-38, %v447_v54  ;;  %vm446_vm9 = vcmp.eq.f32.partialorder %v445_v56, 8.507059e+37 }
 0x271   :  { %v1045_v52 = vpop.eup %1044 }
 0x272   :  { %v437_v41 = vmul.f32 %v1045_v52, %v402_v51  ;;  %vm442_vm6 = vweird.f32 %v1045_v52 }
 0x273   :  { %vm443_vm8 = vmor %vm441_vm7, %vm442_vm6 }
 0x274   :  { %v438_v53 = vsub.f32 1.0, %v437_v41 }
 0x276   :  { %v439_v55 = vmul.f32 %v1045_v52, %v438_v53 }
 0x278   :  { %v440_v57 = vadd.f32 %v1045_v52, %v439_v55 }
 0x27a   :  { %v444_v59 = vsel %vm443_vm8, %v1045_v52, %v440_v57 }
 0x27b   :  { %v449_v60 = vsel %vm446_vm9, %v448_v58, %v444_v59 }
 0x27c   :  { %v450_v61 = vmul.f32 %v1245_v0, %v449_v60 }
 0x27e   :  { %992 = vmatmul.msk.f32.vlgmr.msrb.gmra.mxu2 %vm128_vm1, %v450_v61 }
 0x28a   :  { %v405_v43 = vpop.xlane.xlu1 %404 }
 0x28b   :  { %1046 = vrcp.f32 %v405_v43  ;;  %v462_v2 = vand.u32 2147483648, %v405_v43  ;;  %v460_v4 = vand.u32 2147483647, %v405_v43  ;;  %vm456_vm11 = vweird.f32 %v405_v43 }
 0x28d   :  { %v463_v8 = vor.u32 1.1754944e-38, %v462_v2  ;;  %vm461_vm13 = vcmp.eq.f32.partialorder %v460_v4, 8.507059e+37 }
 0x291   :  { %v1047_v62 = vpop.eup %1046 }
 0x292   :  { %v452_v63 = vmul.f32 %v1047_v62, %v405_v43  ;;  %vm457_vm10 = vweird.f32 %v1047_v62 }
 0x293   :  { %vm458_vm12 = vmor %vm456_vm11, %vm457_vm10 }
 0x294   :  { %v453_v1 = vsub.f32 1.0, %v452_v63 }
 0x296   :  { %v454_v3 = vmul.f32 %v1047_v62, %v453_v1 }
 0x298   :  { %v455_v5 = vadd.f32 %v1047_v62, %v454_v3 }
 0x29a   :  { %v459_v9 = vsel %vm458_vm12, %v1047_v62, %v455_v5  ;;  %v1284_v10 = vpop.xlane.xlu2 %407 }
 0x29b   :  { %v464_v0 = vsel %vm461_vm13, %v463_v8, %v459_v9  ;;  %v477_v56 = vand.u32 2147483648, %v1284_v10  ;;  %vm471_vm9 = vweird.f32 %v1284_v10  ;;  %v475_v58 = vand.u32 2147483647, %v1284_v10 }
 0x29c   :  { %v465_v12 = vmul.f32 %v1249_v7, %v464_v0 }
 0x29d   :  { %v478_v62 = vor.u32 1.1754944e-38, %v477_v56  ;;  %vm476_vm13 = vcmp.eq.f32.partialorder %v475_v58, 8.507059e+37 }
 0x29e   :  { %989 = vmatmul.msk.f32.vlgmr.msrb.gmra.mxu3 %vm128_vm1, %v465_v12 }
 0x2a2   :  { %v1017_v13 = vpop.permute.xlu2 %1016 }
 0x2a3   :  { %v1019_v14 = vunpack.i.h.bf16 %v1017_v13  ;;  %v1018_v15 = vunpack.i.l.bf16 %v1017_v13 }
 0x2a5   :  { %716 = vmatpush.msra.mxu1 %v1018_v15  ;;  %742 = vmatpush.msra.mxu2 %v1019_v14 }
 0x2a7   :  { %v417_v16 = vpop.xlane.xlu0 %416 }
 0x2a8   :  { %1048 = vrcp.f32 %v417_v16  ;;  %v522_v25 = vand.u32 2147483648, %v417_v16  ;;  %v520_v28 = vand.u32 2147483647, %v417_v16  ;;  %vm516_vm15 = vweird.f32 %v417_v16 }
 0x2a9   :  { %1050 = vrcp.f32 %v1284_v10 }
 0x2aa   :  { %v420_v17 = vpop.xlane.xlu1 %419  ;;  %v523_v32 = vor.u32 1.1754944e-38, %v522_v25  ;;  %vm521_vm4 = vcmp.eq.f32.partialorder %v520_v28, 8.507059e+37 }
 0x2ab   :  { %1052 = vrcp.f32 %v420_v17  ;;  %v537_v31 = vand.u32 2147483648, %v420_v17  ;;  %v535_v34 = vand.u32 2147483647, %v420_v17  ;;  %vm531_vm5 = vweird.f32 %v420_v17 }
 0x2ad   :  { %v538_v46 = vor.u32 1.1754944e-38, %v537_v31  ;;  %vm536_vm7 = vcmp.eq.f32.partialorder %v535_v34, 8.507059e+37 }
 0x2ae   :  { %v1049_v18 = vpop.eup %1048 }
 0x2af   :  { %v1289_v19 = vpop.eup %1050  ;;  %v512_v20 = vmul.f32 %v1049_v18, %v417_v16  ;;  %v1291_v21 = vpop.xlane.xlu0 %413  ;;  %vm517_vm14 = vweird.f32 %v1049_v18 }
 0x2b0   :  { %v467_v23 = vmul.f32 %v1289_v19, %v1284_v10  ;;  %1054 = vrcp.f32 %v1291_v21  ;;  %vm518_vm2 = vmor %vm516_vm15, %vm517_vm14  ;;  %vm472_vm8 = vweird.f32 %v1289_v19  ;;  %v507_v8 = vand.u32 2147483648, %v1291_v21 }
 0x2b1   :  { %v1053_v7 = vpop.eup %1052  ;;  %v513_v22 = vsub.f32 1.0, %v512_v20  ;;  %vm473_vm10 = vmor %vm471_vm9, %vm472_vm8  ;;  %v505_v10 = vand.u32 2147483647, %v1291_v21 }
 0x2b2   :  { %v527_v26 = vmul.f32 %v1053_v7, %v420_v17  ;;  %vm532_vm3 = vweird.f32 %v1053_v7  ;;  %v468_v35 = vsub.f32 1.0, %v467_v23  ;;  %v508_v15 = vor.u32 1.1754944e-38, %v507_v8 }
 0x2b3   :  { %v514_v27 = vmul.f32 %v1049_v18, %v513_v22  ;;  %vm533_vm6 = vmor %vm531_vm5, %vm532_vm3  ;;  %vm501_vm3 = vweird.f32 %v1291_v21  ;;  %vm506_vm5 = vcmp.eq.f32.partialorder %v505_v10, 8.507059e+37 }
 0x2b4   :  { %v528_v29 = vsub.f32 1.0, %v527_v26  ;;  %v469_v51 = vmul.f32 %v1289_v19, %v468_v35 }
 0x2b5   :  { %v515_v30 = vadd.f32 %v1049_v18, %v514_v27 }
 0x2b6   :  { %v529_v33 = vmul.f32 %v1053_v7, %v528_v29  ;;  %v1055_v44 = vpop.eup %1054  ;;  %v470_v55 = vadd.f32 %v1289_v19, %v469_v51 }
 0x2b7   :  { %v519_v37 = vsel %vm518_vm2, %v1049_v18, %v515_v30  ;;  %v411_v38 = vpop.xlane.xlu0 %410  ;;  %v497_v52 = vmul.f32 %v1055_v44, %v1291_v21  ;;  %vm502_vm2 = vweird.f32 %v1055_v44  ;;  %v615_v18 = vpop.f32.mrf.mxu1 }
 0x2b8   :  { %v524_v39 = vsel %vm521_vm4, %v523_v32, %v519_v37  ;;  %v530_v42 = vadd.f32 %v1053_v7, %v529_v33  ;;  %1056 = vrcp.f32 %v411_v38  ;;  %v492_v59 = vand.u32 2147483648, %v411_v38  ;;  %vm503_vm4 = vmor %vm501_vm3, %vm502_vm2 }
 0x2b9   :  { %v525_v47 = vmul.f32 %v1259_v36, %v524_v39  ;;  %v498_v36 = vsub.f32 1.0, %v497_v52  ;;  %v474_v43 = vsel %vm473_vm10, %v1289_v19, %v470_v55  ;;  %vm486_vm12 = vweird.f32 %v411_v38  ;;  %v813_v55 = vld [vmem:[%s1399_s1 + $0x38] sm:$0xff] }
 0x2ba   :  { %v534_v48 = vsel %vm533_vm6, %v1053_v7, %v530_v42  ;;  %v493_v1 = vor.u32 1.1754944e-38, %v492_v59  ;;  %v479_v3 = vsel %vm476_vm13, %v478_v62, %v474_v43  ;;  %v1100_v33 = vmov 32.0   ;;  %v853_v62 = vld [vmem:[%s1400_s2 + $0x28] sm:$0xff] }
 0x2bb   :  { %v539_v50 = vsel %vm536_vm7, %v538_v46, %v534_v48  ;;  %995 = vmatmul.msk.f32.vlgmr.msra.gmra.mxu1 %vm128_vm1, %v525_v47  ;;  %v499_v61 = vmul.f32 %v1055_v44, %v498_v36  ;;  %v480_v12 = vmul.f32 %v1253_v24, %v479_v3  ;;  %1058 = vrcp.f32 %v1100_v33  ;;  %v812_v36 = vld [vmem:[%s1399_s1 + $0x18] sm:$0xff]  ;;  %v1023_v33 = vld [vmem:[%s1401_s3 + $0x1] ss:$0 sm:$0xff] }
 0x2bc   :  { %v540_v41 = vmul.f32 %v1264_v40, %v539_v50  ;;  %v490_v40 = vand.u32 2147483647, %v411_v38 }
 0x2bd   :  { %v500_v4 = vadd.f32 %v1055_v44, %v499_v61  ;;  %v854_v61 = vld [vmem:[%s1400_s2 + $0x30] sm:$0xff] }
 0x2be   :  { %v1057_v53 = vpop.eup %1056  ;;  %996 = vmatmul.msk.f32.vlgmr.msra.gmra.mxu2 %vm128_vm1, %v540_v41  ;;  %vm491_vm15 = vcmp.eq.f32.partialorder %v490_v40, 8.507059e+37  ;;  %v855_v40 = vld [vmem:[%s1400_s2 + $0x38] sm:$0xff] }
 0x2bf   :  { %v482_v54 = vmul.f32 %v1057_v53, %v411_v38  ;;  %vm487_vm11 = vweird.f32 %v1057_v53  ;;  %v504_v13 = vsel %vm503_vm4, %v1055_v44, %v500_v4 }
 0x2c0   :  { %vm488_vm14 = vmor %vm486_vm12, %vm487_vm11  ;;  %v509_v16 = vsel %vm506_vm5, %v508_v15, %v504_v13  ;;  %vm857_vm12 = vcmask 523264  }
 0x2c1   :  { %v483_v57 = vsub.f32 1.0, %v482_v54  ;;  %v1059_v34 = vpop.eup %1058  ;;  %v814_v54 = vld [vmem:[%s1399_s1 + $0x58] sm:$0xff] }
 0x2c2   :  { %v668_v14 = vpop.permute.xlu1 %667  ;;  %v760_v35 = vmul.f32 32.0, %v1059_v34 }
 0x2c3   :  { %v484_v60 = vmul.f32 %v1057_v53, %v483_v57 }
 0x2c4   :  { %v761_v37 = vsub.f32 1.0, %v760_v35 }
 0x2c5   :  { %v485_v63 = vadd.f32 %v1057_v53, %v484_v60 }
 0x2c6   :  { %v762_v38 = vmul.f32 %v1059_v34, %v761_v37 }
 0x2c7   :  { %v489_v2 = vsel %vm488_vm14, %v1057_v53, %v485_v63  ;;  %v815_v53 = vld [vmem:[%s1399_s1 + $0x78] sm:$0xff]  ;;  %v852_v63 = vld [vmem:[%s1400_s2 + $0x20] sm:$0xff]  ;;  %s1103_s1 = smov 8  }
 0x2c8   :  { %v494_v5 = vsel %vm491_vm15, %v493_v1, %v489_v2  ;;  %v763_v39 = vadd.f32 %v1059_v34, %v762_v38  ;;  %835 = vmatpush.msrb.mxu3 %v815_v53  ;;  %v851_v2 = vld [vmem:[%s1400_s2 + $0x18] sm:$0xff] }
 0x2c9   :  { %v495_v9 = vmul.f32 %v1274_v49, %v494_v5  ;;  %v510_v49 = vmul.f32 %v1268_v45, %v509_v16 }
 0x2ca   :  { %v570_v0 = vpop.permute.xlu0 %569  ;;  %836 = vmatpush.msrb.mxu3 %v814_v54 }
 0x2cb   :  { %590 = vmatpush.msrb.mxu0 %v570_v0  ;;  %993 = vmatmul.msk.f32.vlgmr.msra.gmra.mxu3 %vm128_vm1, %v495_v9 }
 0x2cc   :  { %990 = vmatmul.msk.f32.vlgmr.msrb.gmra.mxu0 %vm128_vm1, %v480_v12  ;;  %837 = vmatpush.msrb.mxu3 %v813_v55 }
 0x2cd   :  { %688 = vmatpush.msra.mxu0 %v668_v14  ;;  %v1020_v14 = vld [vmem:[%s1401_s3 + $0x2] ss:$0 sm:$0xff] }
 0x2ce   :  { %838 = vmatpush.msrb.mxu3 %v812_v36 }
 0x2cf   :  { %872 = vmatpush.msrb.mxu0 %v855_v40 }
 0x2d1   :  { %873 = vmatpush.msrb.mxu0 %v854_v61 }
 0x2d3   :  { %874 = vmatpush.msrb.mxu0 %v853_v62 }
 0x2d4   :  { %994 = vmatmul.msk.f32.vlgmr.msra.gmra.mxu0 %vm128_vm1, %v510_v49  ;;  %vm764_vm1 = vweird.f32 %v1059_v34 }
 0x2d5   :  { %v1321_v42 = vsel %vm764_vm1, %v1059_v34, %v763_v39  ;;  %875 = vmatpush.msrb.mxu0 %v852_v63 }
 0x2d7   :  { %876 = vmatpush.msrb.mxu0 %v851_v2 }
 0x301   :  { %v638_v24 = vpop.f32.mrf.mxu2 }
 0x321   :  { %v565_v17 = vpop.f32.mrf.mxu3 }
 0x322   :  { %v616_v20 = vadd.f32 %v615_v18, %v565_v17  ;;  %v1021_v18 = vld [vmem:[%s1401_s3 + $0x3] ss:$0 sm:$0xff] }
 0x338   :  { %v718_v22 = vpop.f32.mrf.mxu1 }
 0x341   :  { %v744_v28 = vpop.f32.mrf.mxu2 }
 0x349   :  { %v592_v19 = vpop.f32.mrf.mxu0 }
 0x34a   :  { %v639_v23 = vadd.f32 %v638_v24, %v592_v19 }
 0x34e   :  { %v664_v21 = vpop.f32.mrf.mxu3 }
 0x34f   :  { %v693_v7 = vadd.f32 %v664_v21, %v616_v20 }
 0x351   :  { %v747_v25 = vadd.f32 %v718_v22, %v693_v7  ;;  %v690_v26 = vpop.f32.mrf.mxu0 }
 0x352   :  { %v694_v27 = vadd.f32 %v690_v26, %v639_v23  ;;  %v850_v23 = vld [vmem:[%s1400_s2 + $0x10] sm:$0xff]  ;;  %v848_v26 = vld [vmem:[%s1400_s2] sm:$0xff] }
 0x353   :  { %v749_v29 = vadd.f32 %v747_v25, %v1152_v6  ;;  %877 = vmatpush.msrb.mxu0 %v850_v23  ;;  %v849_v25 = vld [vmem:[%s1400_s2 + $0x8] sm:$0xff] }
 0x354   :  { %v748_v30 = vadd.f32 %v744_v28, %v694_v27  ;;  %v1022_v27 = vld [vmem:[%s1401_s3] ss:$0 sm:$0xff] }
 0x355   :  { %v753_v45 = vsel %vm34_vm0, %v749_v29, 0.0  ;;  %878 = vmatpush.msrb.mxu0 %v849_v25 }
 0x356   :  { %754 = vadd.xlane.f32.xlu0 %v753_v45  ;;  %v750_v31 = vadd.f32 %v748_v30, %v1176_v11 }
 0x357   :  { %879 = vmatpush.msrb.mxu0 %v848_v26 }
 0x358   :  { %v756_v32 = vsel %vm34_vm0, %v750_v31, 0.0 }
 0x359   :  { %757 = vadd.xlane.f32.xlu2 %v756_v32 }
 0x3c9   :  { %v755_v6 = vpop.xlane.xlu0 %754 }
 0x3ca   :  { %v766_v44 = vmul.f32 %v1321_v42, %v755_v6 }
 0x3cc   :  { %v768_v46 = vsub.f32 %v749_v29, %v766_v44  ;;  %v758_v47 = vpop.xlane.xlu2 %757 }
 0x3cd   :  { %v767_v11 = vmul.f32 %v1321_v42, %v758_v47 }
 0x3ce   :  { %v770_v48 = vmul.f32 %v768_v46, %v768_v46 }
 0x3cf   :  { %v769_v50 = vsub.f32 %v750_v31, %v767_v11 }
 0x3d0   :  { %v772_v51 = vsel %vm34_vm0, %v770_v48, 0.0 }
 0x3d1   :  { %773 = vadd.xlane.f32.xlu1 %v772_v51  ;;  %v771_v52 = vmul.f32 %v769_v50, %v769_v50 }
 0x3d3   :  { %v775_v41 = vsel %vm34_vm0, %v771_v52, 0.0 }
 0x3d4   :  { %776 = vadd.xlane.f32.xlu0 %v775_v41 }
 0x444   :  { %v774_v56 = vpop.xlane.xlu1 %773 }
 0x445   :  { %v778_v57 = vmul.f32 %v774_v56, %v1321_v42 }
 0x447   :  { %v780_v58 = vadd.f32 1e-05, %v778_v57  ;;  %v777_v59 = vpop.xlane.xlu0 %776 }
 0x448   :  { %v779_v60 = vmul.f32 %v777_v59, %v1321_v42 }
 0x449   :  { %1060 = vrsqrt.f32 %v780_v58  ;;  %vm788_vm7 = vweird.f32 %v780_v58 }
 0x44a   :  { %v781_v43 = vadd.f32 1e-05, %v779_v60 }
 0x44c   :  { %1062 = vrsqrt.f32 %v781_v43  ;;  %vm798_vm10 = vweird.f32 %v781_v43 }
 0x44f   :  { %v1061_v1 = vpop.eup %1060 }
 0x450   :  { %v783_v3 = vmul.f32 %v1061_v1, %v780_v58  ;;  %vm789_vm6 = vweird.f32 %v1061_v1 }
 0x451   :  { %vm790_vm8 = vmor %vm788_vm7, %vm789_vm6 }
 0x452   :  { %v1063_v4 = vpop.eup %1062  ;;  %v784_v5 = vmul.f32 %v1061_v1, %v783_v3 }
 0x453   :  { %v793_v8 = vmul.f32 %v1063_v4, %v781_v43  ;;  %vm799_vm9 = vweird.f32 %v1063_v4 }
 0x454   :  { %v785_v9 = vmul.f32 0.5, %v784_v5  ;;  %vm800_vm11 = vmor %vm798_vm10, %vm799_vm9 }
 0x455   :  { %v794_v10 = vmul.f32 %v1063_v4, %v793_v8 }
 0x456   :  { %v786_v0 = vsub.f32 1.5, %v785_v9  ;;  %v1025_v9 = vld [vmem:[%s1401_s3 + $0x5] ss:$0 sm:$0xff] }
 0x457   :  { %v795_v12 = vmul.f32 0.5, %v794_v10 }
 0x458   :  { %v787_v13 = vmul.f32 %v1061_v1, %v786_v0 }
 0x459   :  { %v796_v15 = vsub.f32 1.5, %v795_v12 }
 0x45a   :  { %v791_v16 = vsel %vm790_vm8, %v1061_v1, %v787_v13 }
 0x45b   :  { %v802_v49 = vmul.f32 %v791_v16, %v768_v46  ;;  %v797_v17 = vmul.f32 %v1063_v4, %v796_v15 }
 0x45d   :  { %v805_v19 = vmul.f32 %v1020_v14, %v802_v49  ;;  %v801_v24 = vsel %vm800_vm11, %v1063_v4, %v797_v17  ;;  %v1024_v4 = vld [vmem:[%s1401_s3 + $0x4] ss:$0 sm:$0xff]  ;;  %s1102_s3 = smov 128  }
 0x45e   :  { %v803_v21 = vmul.f32 %v801_v24, %v769_v50 }
 0x45f   :  { %v808_v20 = vadd.f32 %v1021_v18, %v805_v19 }
 0x460   :  { %v806_v7 = vmul.f32 %v1020_v14, %v803_v21 }
 0x461   :  { %997 = vmatmul.msk.f32.vlgmr.msrb.gmra.mxu3 %vm34_vm0, %v808_v20 }
 0x462   :  { %v809_v22 = vadd.f32 %v1021_v18, %v806_v7 }
 0x469   :  { %998 = vmatmul.msk.f32.gmra.mxu3 %vm34_vm0, %v809_v22 }
 0x4e4   :  { %v840_v28 = vpop.f32.mrf.mxu3 }
 0x4e5   :  { %v841_v29 = vadd.f32 %v1022_v27, %v840_v28 }
 0x4e7   :  { %v846_v30 = vmax.f32 %v841_v29, 0.0 }
 0x4e9   :  { %999 = vmatmul.msk.f32.vlgmr.msrb.gmra.mxu0 %vm857_vm12, %v846_v30 }
 0x4ec   :  { %v843_v45 = vpop.f32.mrf.mxu3 }
 0x4ed   :  { %v844_v31 = vadd.f32 %v1022_v27, %v843_v45 }
 0x4ef   :  { %v847_v32 = vmax.f32 %v844_v31, 0.0 }
 0x4f1   :  { %1000 = vmatmul.msk.f32.gmra.mxu0 %vm857_vm12, %v847_v32 }
 0x566   :  { %v881_v34 = vpop.f32.mrf.mxu0 }
 0x567   :  { %v882_v35 = vadd.f32 %v1023_v33, %v881_v34 }
 0x569   :  { %v887_v37 = vadd.f32 %v882_v35, %v808_v20 }
 0x56b   :  { %v891_v38 = vsel %vm34_vm0, %v887_v37, 0.0 }
 0x56c   :  { %892 = vadd.xlane.f32.xlu2 %v891_v38 }
 0x56e   :  { %v884_v39 = vpop.f32.mrf.mxu0 }
 0x56f   :  { %v885_v6 = vadd.f32 %v1023_v33, %v884_v39 }
 0x571   :  { %v888_v44 = vadd.f32 %v885_v6, %v809_v22 }
 0x573   :  { %v894_v46 = vsel %vm34_vm0, %v888_v44, 0.0 }
 0x574   :  { %895 = vadd.xlane.f32.xlu1 %v894_v46 }
 0x5df   :  { %v893_v47 = vpop.xlane.xlu2 %892 }
 0x5e0   :  { %v897_v11 = vmul.f32 %v893_v47, %v1321_v42 }
 0x5e2   :  { %v899_v48 = vsub.f32 %v887_v37, %v897_v11 }
 0x5e4   :  { %v901_v50 = vmul.f32 %v899_v48, %v899_v48 }
 0x5e6   :  { %v903_v51 = vsel %vm34_vm0, %v901_v50, 0.0 }
 0x5e7   :  { %904 = vadd.xlane.f32.xlu0 %v903_v51  ;;  %v896_v52 = vpop.xlane.xlu1 %895 }
 0x5e8   :  { %v898_v41 = vmul.f32 %v896_v52, %v1321_v42 }
 0x5ea   :  { %v900_v53 = vsub.f32 %v888_v44, %v898_v41 }
 0x5ec   :  { %v902_v54 = vmul.f32 %v900_v53, %v900_v53 }
 0x5ee   :  { %v906_v55 = vsel %vm34_vm0, %v902_v54, 0.0 }
 0x5ef   :  { %907 = vadd.xlane.f32.xlu2 %v906_v55 }
 0x65a   :  { %v905_v36 = vpop.xlane.xlu0 %904 }
 0x65b   :  { %v909_v56 = vmul.f32 %v905_v36, %v1321_v42 }
 0x65d   :  { %v911_v57 = vadd.f32 1e-05, %v909_v56 }
 0x65f   :  { %1064 = vrsqrt.f32 %v911_v57  ;;  %vm919_vm14 = vweird.f32 %v911_v57 }
 0x662   :  { %v908_v58 = vpop.xlane.xlu2 %907 }
 0x663   :  { %v910_v59 = vmul.f32 %v908_v58, %v1321_v42 }
 0x665   :  { %v1065_v60 = vpop.eup %1064  ;;  %v912_v40 = vadd.f32 1e-05, %v910_v59 }
 0x666   :  { %v914_v61 = vmul.f32 %v1065_v60, %v911_v57  ;;  %vm920_vm13 = vweird.f32 %v1065_v60 }
 0x667   :  { %1066 = vrsqrt.f32 %v912_v40  ;;  %vm921_vm15 = vmor %vm919_vm14, %vm920_vm13  ;;  %vm929_vm3 = vweird.f32 %v912_v40 }
 0x668   :  { %v915_v43 = vmul.f32 %v1065_v60, %v914_v61 }
 0x66a   :  { %v916_v62 = vmul.f32 0.5, %v915_v43 }
 0x66c   :  { %v917_v63 = vsub.f32 1.5, %v916_v62 }
 0x66d   :  { %v1067_v1 = vpop.eup %1066 }
 0x66e   :  { %v918_v2 = vmul.f32 %v1065_v60, %v917_v63  ;;  %v924_v3 = vmul.f32 %v1067_v1, %v912_v40  ;;  %vm930_vm2 = vweird.f32 %v1067_v1 }
 0x66f   :  { %vm931_vm4 = vmor %vm929_vm3, %vm930_vm2 }
 0x670   :  { %v922_v5 = vsel %vm921_vm15, %v1065_v60, %v918_v2  ;;  %v925_v8 = vmul.f32 %v1067_v1, %v924_v3 }
 0x671   :  { %v933_v42 = vmul.f32 %v922_v5, %v899_v48 }
 0x672   :  { %v926_v10 = vmul.f32 0.5, %v925_v8 }
 0x673   :  { %v936_v0 = vmul.f32 %v1024_v4, %v933_v42 }
 0x674   :  { %v927_v12 = vsub.f32 1.5, %v926_v10 }
 0x675   :  { %v939_v13 = vadd.f32 %v1025_v9, %v936_v0 }
 0x676   :  { %v928_v14 = vmul.f32 %v1067_v1, %v927_v12 }
 0x677   :  { %941 = vst.msk [vmem:[#allocation2] sm:$0xff] %vm34_vm0, %v939_v13 }
 0x678   :  { %v932_v15 = vsel %vm931_vm4, %v1067_v1, %v928_v14 }
 0x679   :  { %v934_v16 = vmul.f32 %v932_v15, %v900_v53 }
 0x67b   :  { %v937_v49 = vmul.f32 %v1024_v4, %v934_v16 }
 0x67d   :  { %v940_v17 = vadd.f32 %v1025_v9, %v937_v49 }
 0x67f   :  { %942 = vst.msk [vmem:[#allocation2 + $0x8] sm:$0xff] %vm34_vm0, %v940_v17 }
 0x680   :  { %955 = dma.vmem_to_hbm [thread:$0]  %s948_s8, 256, %s950_s11, [#allocation3], %s1102_s3, %s1102_s3, %s1103_s1  }
 0x681   :  { %1092 = dma.done.wait [#allocation3], 256  }
 0x682   :  { %1093 = vsyncadd [#allocation3], 4294967040 }
 0x683   :  { %960 = vsyncpa [#allocation3], 1 }

</bundles_post_ra>
